<compile_context>
chip_gen: v6e
topology: v6e:2x2x1
jax: 0.10.0
libtpu: 0.0.40
codegen_flags: <defaults>
</compile_context>

<pallas_src>
import functools

import jax
import jax.numpy as jnp
from jax import lax
from jax.experimental import pallas as pl
from jax.experimental.pallas import tpu as pltpu


def _focal_kernel(x_ref, t_ref, out_ref, acc_ref, *, gamma, n_classes,
                  hw, tile_m, total_m):
    # x_ref:  (C, TM)  logits tile (class on sublanes, spatial on lanes)
    # t_ref:  (1, TM)  int32 target tile
    # out_ref:(1, 1)   scalar output (resident across the whole grid)
    # acc_ref:(1, TM)  f32 vector partial-sum accumulator
    n = pl.program_id(0)          # batch index
    j = pl.program_id(1)          # spatial tile index

    @pl.when(jnp.logical_and(n == 0, j == 0))
    def _():
        acc_ref[...] = jnp.zeros_like(acc_ref)

    x = x_ref[...].astype(jnp.float32)     # (C, TM)
    t = t_ref[...]                         # (1, TM) int32

    C = n_classes
    if C <= 16:
        # Unrolled, pure-VPU path: maximum / add / select over C row slices.
        m = x[0:1, :]
        for c in range(1, C):
            m = jnp.maximum(m, x[c:c + 1, :])
        s = jnp.zeros_like(m)
        logit_t = x[0:1, :]
        for c in range(C):
            xc = x[c:c + 1, :]
            s = s + jnp.exp(xc - m)
            if c > 0:
                logit_t = jnp.where(t == c, xc, logit_t)
    else:
        # Vectorized fallback for many classes.
        m = jnp.max(x, axis=0, keepdims=True)
        s = jnp.sum(jnp.exp(x - m), axis=0, keepdims=True)
        cls = lax.broadcasted_iota(jnp.int32, x.shape, 0)
        logit_t = jnp.sum(jnp.where(cls == t, x, 0.0), axis=0, keepdims=True)

    lse = m + jnp.log(s)                   # (1, TM)
    ce = lse - logit_t                     # (1, TM)
    pt = jnp.exp(-ce)
    one_minus_pt = 1.0 - pt

    g = float(gamma)
    if g.is_integer() and 0 <= int(g) <= 8:
        # small-integer gamma -> repeated multiply (VALU), no pow (EUP log+exp)
        w = jnp.ones_like(one_minus_pt)
        for _ in range(int(g)):
            w = w * one_minus_pt
    else:
        w = jnp.power(one_minus_pt, g)
    focal = w * ce                          # (1, TM)

    if hw % tile_m != 0:
        # Mask the ragged last spatial tile.
        col = j * tile_m + lax.broadcasted_iota(jnp.int32, focal.shape, 1)
        focal = jnp.where(col < hw, focal, 0.0)

    acc_ref[...] += focal

    @pl.when(jnp.logical_and(n == pl.num_programs(0) - 1,
                             j == pl.num_programs(1) - 1))
    def _():
        out_ref[...] = (jnp.sum(acc_ref[...], keepdims=True)
                        / jnp.float32(total_m))


def focal_loss(logits_nchw, target_n1hw, gamma=2.0, tile_m=None):
    """Pallas focal loss. logits: (N,C,H,W) float; target: (N,1,H,W) int."""
    N, C, H, W = logits_nchw.shape
    HW = H * W
    M = N * HW

    # Lane-dense tile along flattened spatial axis; target ~4 MiB logits block
    # (fits double-buffered inside the v5e 16 MiB scoped-VMEM default).
    if tile_m is None:
        budget_bytes = 4 * 1024 * 1024
        tile_m = budget_bytes // (C * 4)
    tile_m = max(128, (int(tile_m) // 128) * 128)
    hw_pad = ((HW + 127) // 128) * 128
    tile_m = min(tile_m, hw_pad)

    n_tiles = pl.cdiv(HW, tile_m)

    # Free reshapes (no transpose, no extra HBM traffic).
    x3 = logits_nchw.reshape(N, C, HW)
    t3 = target_n1hw.reshape(N, 1, HW).astype(jnp.int32)

    kernel = functools.partial(
        _focal_kernel, gamma=float(gamma), n_classes=C,
        hw=HW, tile_m=tile_m, total_m=M)

    out = pl.pallas_call(
        kernel,
        out_shape=jax.ShapeDtypeStruct((1, 1), jnp.float32),
        grid_spec=pltpu.PrefetchScalarGridSpec(
            num_scalar_prefetch=0,
            grid=(N, n_tiles),
            in_specs=[
                pl.BlockSpec((None, C, tile_m), lambda n, j: (n, 0, j)),
                pl.BlockSpec((None, 1, tile_m), lambda n, j: (n, 0, j)),
            ],
            out_specs=pl.BlockSpec((1, 1), lambda n, j: (0, 0)),
            scratch_shapes=[pltpu.VMEM((1, tile_m), jnp.float32)],
        ),
        compiler_params=pltpu.CompilerParams(
            dimension_semantics=("arbitrary", "arbitrary")),
    )(x3, t3)
    return out[0, 0]


def _focal_loss_ref(logits_nchw, target_n1hw, gamma=2.0):
    # plain-JAX reference (mirrors F.cross_entropy reduction='none')
    N, C, H, W = logits_nchw.shape
    x = jnp.transpose(logits_nchw, (0, 2, 3, 1)).reshape(-1, C).astype(jnp.float32)
    t = target_n1hw.reshape(-1).astype(jnp.int32)
    lse = jax.scipy.special.logsumexp(x, axis=-1)
    ce = lse - jnp.take_along_axis(x, t[:, None], axis=-1)[:, 0]
    pt = jnp.exp(-ce)
    return jnp.mean((1.0 - pt) ** gamma * ce)


if __name__ == "__main__":
    key = jax.random.PRNGKey(0)
    k1, k2 = jax.random.split(key)

    N, C, H, W = 2, 4, 16, 16
    logits = jax.random.normal(k1, (N, C, H, W), dtype=jnp.float32)
    target = jax.random.randint(k2, (N, 1, H, W), 0, C, dtype=jnp.int32)

    out = focal_loss(logits, target, gamma=2.0)
    out = jax.block_until_ready(out)

    ref = _focal_loss_ref(logits, target, gamma=2.0)
    assert jnp.allclose(out, ref, rtol=1e-5, atol=1e-5), (out, ref)

    print("KERNEL_OK")
</pallas_src>

<mosaic_0001>
module attributes {stable_mosaic.version = 11 : i64} {
  func.func @_focal_kernel(%arg0: i32, %arg1: i32, %arg2: memref<1x4x256xf32, #tpu.memory_space<vmem>>, %arg3: memref<1x1x256xi32, #tpu.memory_space<vmem>>, %arg4: memref<1x1xf32, #tpu.memory_space<vmem>>, %arg5: memref<1x256xf32, #tpu.memory_space<vmem>>) attributes {dimension_semantics = [#tpu.dimension_semantics<arbitrary>, #tpu.dimension_semantics<arbitrary>], iteration_bounds = array<i64: 2, 1>, scalar_prefetch = 0 : i64, scratch_operands = 1 : i64, tpu.core_type = #tpu.core_type<tc>, window_params = [{transform_indices = @transform_0, window_bounds = array<i64: 1, 4, 256>}, {transform_indices = @transform_1, window_bounds = array<i64: 1, 1, 256>}, {pipeline_mode = #tpu.pipeline_mode<synchronous>, transform_indices = @transform_2, window_bounds = array<i64: 1, 1>}]} {
    %c0_i32 = arith.constant 0 : i32
    %0 = arith.cmpi eq, %arg0, %c0_i32 : i32
    %c0_i32_0 = arith.constant 0 : i32
    %1 = arith.cmpi eq, %arg1, %c0_i32_0 : i32
    %2 = arith.andi %0, %1 : i1
    %3 = arith.extui %2 : i1 to i32
    %c0_i32_1 = arith.constant 0 : i32
    %4 = arith.cmpi ne, %3, %c0_i32_1 : i32
    scf.if %4 {
      %cst_17 = arith.constant 0.000000e+00 : f32
      %63 = vector.broadcast %cst_17 : f32 to vector<1x256xf32>
      %c0_18 = arith.constant 0 : index
      %c0_19 = arith.constant 0 : index
      %64 = vector.load %arg5[%c0_18, %c0_19] : memref<1x256xf32, #tpu.memory_space<vmem>>, vector<1x256xf32>
      tpu.vector_store %arg5[%c0_18, %c0_19], %63 {strides = array<i32>} : memref<1x256xf32, #tpu.memory_space<vmem>>, vector<1x256xf32>,
    } else {
    }
    %c0 = arith.constant 0 : index
    %c0_2 = arith.constant 0 : index
    %c0_3 = arith.constant 0 : index
    %5 = vector.load %arg2[%c0, %c0_2, %c0_3] : memref<1x4x256xf32, #tpu.memory_space<vmem>>, vector<1x4x256xf32>
    %6 = vector.shape_cast %5 : vector<1x4x256xf32> to vector<4x256xf32>
    %c0_4 = arith.constant 0 : index
    %c0_5 = arith.constant 0 : index
    %c0_6 = arith.constant 0 : index
    %7 = vector.load %arg3[%c0_4, %c0_5, %c0_6] : memref<1x1x256xi32, #tpu.memory_space<vmem>>, vector<1x1x256xi32>
    %8 = vector.shape_cast %7 : vector<1x1x256xi32> to vector<1x256xi32>
    %9 = vector.extract_strided_slice %6 {offsets = [0, 0], sizes = [1, 256], strides = [1, 1]} : vector<4x256xf32> to vector<1x256xf32>
    %10 = vector.extract_strided_slice %6 {offsets = [1, 0], sizes = [1, 256], strides = [1, 1]} : vector<4x256xf32> to vector<1x256xf32>
    %11 = arith.maximumf %9, %10 : vector<1x256xf32>
    %12 = vector.extract_strided_slice %6 {offsets = [2, 0], sizes = [1, 256], strides = [1, 1]} : vector<4x256xf32> to vector<1x256xf32>
    %13 = arith.maximumf %11, %12 : vector<1x256xf32>
    %14 = vector.extract_strided_slice %6 {offsets = [3, 0], sizes = [1, 256], strides = [1, 1]} : vector<4x256xf32> to vector<1x256xf32>
    %15 = arith.maximumf %13, %14 : vector<1x256xf32>
    %cst = arith.constant 0.000000e+00 : f32
    %16 = vector.broadcast %cst : f32 to vector<1x256xf32>
    %17 = vector.extract_strided_slice %6 {offsets = [0, 0], sizes = [1, 256], strides = [1, 1]} : vector<4x256xf32> to vector<1x256xf32>
    %18 = vector.extract_strided_slice %6 {offsets = [0, 0], sizes = [1, 256], strides = [1, 1]} : vector<4x256xf32> to vector<1x256xf32>
    %19 = arith.subf %18, %15 : vector<1x256xf32>
    %20 = math.exp %19 : vector<1x256xf32>
    %21 = arith.addf %16, %20 : vector<1x256xf32>
    %22 = vector.extract_strided_slice %6 {offsets = [1, 0], sizes = [1, 256], strides = [1, 1]} : vector<4x256xf32> to vector<1x256xf32>
    %23 = arith.subf %22, %15 : vector<1x256xf32>
    %24 = math.exp %23 : vector<1x256xf32>
    %25 = arith.addf %21, %24 : vector<1x256xf32>
    %c1_i32 = arith.constant 1 : i32
    %26 = vector.broadcast %c1_i32 : i32 to vector<1x256xi32>
    %27 = arith.cmpi eq, %8, %26 : vector<1x256xi32>
    %28 = arith.select %27, %22, %17 : vector<1x256xi1>, vector<1x256xf32>
    %29 = vector.extract_strided_slice %6 {offsets = [2, 0], sizes = [1, 256], strides = [1, 1]} : vector<4x256xf32> to vector<1x256xf32>
    %30 = arith.subf %29, %15 : vector<1x256xf32>
    %31 = math.exp %30 : vector<1x256xf32>
    %32 = arith.addf %25, %31 : vector<1x256xf32>
    %c2_i32 = arith.constant 2 : i32
    %33 = vector.broadcast %c2_i32 : i32 to vector<1x256xi32>
    %34 = arith.cmpi eq, %8, %33 : vector<1x256xi32>
    %35 = arith.select %34, %29, %28 : vector<1x256xi1>, vector<1x256xf32>
    %36 = vector.extract_strided_slice %6 {offsets = [3, 0], sizes = [1, 256], strides = [1, 1]} : vector<4x256xf32> to vector<1x256xf32>
    %37 = arith.subf %36, %15 : vector<1x256xf32>
    %38 = math.exp %37 : vector<1x256xf32>
    %39 = arith.addf %32, %38 : vector<1x256xf32>
    %c3_i32 = arith.constant 3 : i32
    %40 = vector.broadcast %c3_i32 : i32 to vector<1x256xi32>
    %41 = arith.cmpi eq, %8, %40 : vector<1x256xi32>
    %42 = arith.select %41, %36, %35 : vector<1x256xi1>, vector<1x256xf32>
    %43 = math.log %39 : vector<1x256xf32>
    %44 = arith.addf %15, %43 : vector<1x256xf32>
    %45 = arith.subf %44, %42 : vector<1x256xf32>
    %cst_7 = arith.constant 0.000000e+00 : f32
    %46 = vector.broadcast %cst_7 : f32 to vector<1x256xf32>
    %47 = arith.subf %46, %45 : vector<1x256xf32>
    %48 = math.exp %47 : vector<1x256xf32>
    %cst_8 = arith.constant 1.000000e+00 : f32
    %49 = vector.broadcast %cst_8 : f32 to vector<1x256xf32>
    %50 = arith.subf %49, %48 : vector<1x256xf32>
    %cst_9 = arith.constant 1.000000e+00 : f32
    %51 = vector.broadcast %cst_9 : f32 to vector<1x256xf32>
    %52 = arith.mulf %51, %50 : vector<1x256xf32>
    %53 = arith.mulf %52, %50 : vector<1x256xf32>
    %54 = arith.mulf %53, %45 : vector<1x256xf32>
    %c0_10 = arith.constant 0 : index
    %c0_11 = arith.constant 0 : index
    %55 = vector.load %arg5[%c0_10, %c0_11] : memref<1x256xf32, #tpu.memory_space<vmem>>, vector<1x256xf32>
    %56 = arith.addf %55, %54 : vector<1x256xf32>
    %c0_12 = arith.constant 0 : index
    %c0_13 = arith.constant 0 : index
    %57 = vector.load %arg5[%c0_12, %c0_13] : memref<1x256xf32, #tpu.memory_space<vmem>>, vector<1x256xf32>
    tpu.vector_store %arg5[%c0_12, %c0_13], %56 {strides = array<i32>} : memref<1x256xf32, #tpu.memory_space<vmem>>, vector<1x256xf32>,
    %c1_i32_14 = arith.constant 1 : i32
    %58 = arith.cmpi eq, %arg0, %c1_i32_14 : i32
    %c0_i32_15 = arith.constant 0 : i32
    %59 = arith.cmpi eq, %arg1, %c0_i32_15 : i32
    %60 = arith.andi %58, %59 : i1
    %61 = arith.extui %60 : i1 to i32
    %c0_i32_16 = arith.constant 0 : i32
    %62 = arith.cmpi ne, %61, %c0_i32_16 : i32
    scf.if %62 {
      %c0_17 = arith.constant 0 : index
      %c0_18 = arith.constant 0 : index
      %63 = vector.load %arg5[%c0_17, %c0_18] : memref<1x256xf32, #tpu.memory_space<vmem>>, vector<1x256xf32>
      %64 = vector.shape_cast %63 : vector<1x256xf32> to vector<1x1x256xf32>
      %cst_19 = arith.constant dense<0.000000e+00> : vector<1xf32>
      %65 = vector.multi_reduction <add>, %64, %cst_19 [1, 2] : vector<1x1x256xf32> to vector<1xf32>
      %66 = vector.shape_cast %65 : vector<1xf32> to vector<1x1x1xf32>
      %67 = vector.extract %66[0, 0, 0] : f32 from vector<1x1x1xf32>
      %68 = vector.broadcast %67 : f32 to vector<1x1xf32>
      %cst_20 = arith.constant 5.120000e+02 : f32
      %69 = vector.broadcast %cst_20 : f32 to vector<1x1xf32>
      %70 = arith.divf %68, %69 : vector<1x1xf32>
      %c0_21 = arith.constant 0 : index
      %c0_22 = arith.constant 0 : index
      %71 = vector.load %arg4[%c0_21, %c0_22] : memref<1x1xf32, #tpu.memory_space<vmem>>, vector<1x1xf32>
      tpu.vector_store %arg4[%c0_21, %c0_22], %70 {strides = array<i32>} : memref<1x1xf32, #tpu.memory_space<vmem>>, vector<1x1xf32>,
    } else {
    }
    return
  }
  func.func @transform_0(%arg0: i32, %arg1: i32) -> (i32, i32, i32) {
    %c0_i32 = arith.constant 0 : i32
    %c0_i32_0 = arith.constant 0 : i32
    return %arg0, %c0_i32, %arg1 : i32, i32, i32
  }
  func.func @transform_1(%arg0: i32, %arg1: i32) -> (i32, i32, i32) {
    %c0_i32 = arith.constant 0 : i32
    %c0_i32_0 = arith.constant 0 : i32
    return %arg0, %c0_i32, %arg1 : i32, i32, i32
  }
  func.func @transform_2(%arg0: i32, %arg1: i32) -> (i32, i32) {
    %c0_i32 = arith.constant 0 : i32
    %c0_i32_0 = arith.constant 0 : i32
    %c0_i32_1 = arith.constant 0 : i32
    return %c0_i32, %c0_i32_0 : i32, i32
  }
}

</mosaic_0001>

<bundles_post_ra>
// kernel: tpu_custom_call.1
= control target key start
LH: loop header
LB: loop body
LE: loop exit
PB: predicated region body
PF: predicated region fallthrough
CT: control target
= control target key end

     0   :  { %7 = vsyncpa [#allocation4], 0  ;;  %s897_s0 = inlined_call_operand.hbm [shape: f32[2,4,256], index: 0, kind: input, shape index: {}]   ;;  %s898_s1 = inlined_call_operand.hbm [shape: s32[2,1,256], index: 1, kind: input, shape index: {}]   ;;  %s899_s2 = inlined_call_operand.hbm [shape: f32[1,1], index: 2, kind: output, shape index: {}]  }
   0x1   :  { %9 = vsyncpa [#allocation4 + $0x1], 0 }
   0x2   :  { %10 = vsyncpa [#allocation7], 0 }
   0x3   :  { %12 = vsyncpa [#allocation7 + $0x1], 0 }
   0x4   :  { %13 = vsyncpa [#allocation5], 0  ;;  %s748_s9 = smov 0   ;;  %s750_s10 = smov 0  }
   0x5   :  { %s752_s11 = smov 0   ;;  %s754_s12 = smov 0  }
   0x6   :  { %s756_s13 = smov 0   ;;  %s758_s14 = smov 0  }
   0x7 LB: > { %s475_s15 = sadd.s32 4294967295, %s725_s14   ;;  %s31_s16 = sadd.s32 1, %s721_s13  ;;  %s725_s14 = sphi %s758_s14, %s19_s14   ;;  %s721_s13 = sphi %s756_s13, %s909_s13   ;;  %s717_s12 = sphi %s754_s12, %s908_s12   ;;  %s713_s11 = sphi %s752_s11, %s907_s11   ;;  %s709_s10 = sphi %s750_s10, %s906_s10   ;;  %s705_s9 = sphi %s748_s9, %s905_s9  }
   0x8   : > { %p33_p0 = scmp.ge.s32.totalorder %s31_s16, 2  ;;  %s40_s17 = sadd.s32 1, %s713_s11 }
   0x9   : > { %p47_p1 = scmp.ne.s32.totalorder %s713_s11, %s709_s10  ;;  %p48_p2 = scmp.eq.s32.totalorder %s725_s14, 0 }
   0xa   : > { %s911_s16 = smov (%p33_p0, %s31_s16), 0  ;;  %p53_p4 = scmp.ne.s32.totalorder %s709_s10, %s705_s9 }
   0xb   : > { %p784_p3 = por %p48_p2, %p47_p1  ;;  %s35_s19 = ssub.s32 %s721_s13, %s911_s16 }
   0xc   : > { %p54_p5 = scmp.eq.s32.totalorder %s475_s15, 0  ;;  %p38_p6 = scmp.eq.s32.totalorder %s35_s19, 0 }
   0xd   : > { %p520_p8 = scmp.lt.s32.totalorder %s725_s14, 2  ;;  %s802_s22 = sand.u32 1, %s713_s11  }
   0xe   : > { %p793_p7 = por %p54_p5, %p53_p4  ;;  %s499_s23 = sshll.u32 %s721_s13, 7 }
   0xf   : > { %s799_s21 = scalar_select %p38_p6, %s713_s11, %s40_s17  }
  0x10   : > { %s478_s24 = sshll.u32 %s802_s22, 3  ;;  %s138_s27 = scalar_lea.hbm %s897_s0, %s499_s23 }
  0x11   : > { %s130_s28 = scalar_lea.vmem [#allocation3], %s478_s24  ;;  %p811_p9 = pnand %p520_p8, %p784_p3 }
  0x12   : > { %s140_s29 = sshll.u32 %s130_s28, 4  ;;  %p484_p10 = scmp.ge.s32.totalorder %s725_s14, 1  ;;  %s141_s29 = int_to_ptr.vmem [resolvable:$true] %s140_s29 }
  0x13   : > { %p166_p11 = scmp.lt.s32.totalorder %s725_s14, 3  ;;  %s127_s3 = scalar_lea.sflag [#allocation4], %s802_s22 }
  0x14   : > { %p589_p12 = pneg %p811_p9  ;;  %s600_s4 = scalar_lea.vmem %s141_s29, 128 }
  0x15   : > { %p601_p13 = scmp.ne.s32.totalorder %s141_s29, %s600_s4  ;;  %s727_s5 = smov [#allocation3]  }
  0x16   : > { %s605_s6 = sshll.u32 %s727_s5, 4  ;;  %s606_s6 = int_to_ptr.vmem [resolvable:$false] %s605_s6 }
  0x17   : > { %p603_p0 = pnand %p601_p13, %p589_p12  ;;  %s607_s7 = scalar_lea.vmem %s606_s6, 256 }
  0x18   : > { %p608_p2 = scmp.lt.s32.totalorder %s141_s29, %s606_s6  ;;  %p609_p3 = scmp.lt.s32.totalorder %s607_s7, %s600_s4 }
  0x19   : > { %p604_p1 = pneg %p603_p0 }
  0x1a   : > { %p610_p4 = por %p609_p3, %p608_p2 }
  0x1c   : > { %p611_p5 = pnand %p610_p4, %p604_p1 }
  0x1e   : > { %614 = shalt.err (!%p611_p5)
}
  0x1f   : > { %516 = dma.hbm_to_vmem [thread:$0]  (!%p811_p9), %s138_s27, 128, %s141_s29, %s127_s3  }
  0x20   : > { %p829_p6 = pnand %p484_p10, %p166_p11  ;;  %s481_s9 = sshll.u32 %s802_s22, 1 }
  0x21   : > { %s500_s17 = sshll.u32 %s721_s13, 5  ;;  %s151_s24 = scalar_lea.vmem [#allocation6], %s481_s9 }
  0x22   : > { %s159_s23 = scalar_lea.hbm %s898_s1, %s500_s17  ;;  %s161_s25 = sshll.u32 %s151_s24, 4  ;;  %s162_s25 = int_to_ptr.vmem [resolvable:$true] %s161_s25 }
  0x23   : > { %s148_s26 = scalar_lea.sflag [#allocation7], %s802_s22  ;;  %s628_s28 = scalar_lea.vmem %s162_s25, 32 }
  0x24   : > { %p629_p8 = scmp.ne.s32.totalorder %s162_s25, %s628_s28  ;;  %s728_s27 = smov [#allocation6]  }
  0x25   : > { %s633_s29 = sshll.u32 %s728_s27, 4  ;;  %s634_s29 = int_to_ptr.vmem [resolvable:$false] %s633_s29 }
  0x26   : > { %p631_p13 = pnand %p629_p8, %p589_p12  ;;  %s635_s3 = scalar_lea.vmem %s634_s29, 64 }
  0x27   : > { %p636_p10 = scmp.lt.s32.totalorder %s162_s25, %s634_s29  ;;  %p637_p11 = scmp.lt.s32.totalorder %s635_s3, %s628_s28 }
  0x28   : > { %p632_p0 = pneg %p631_p13 }
  0x29   : > { %p638_p1 = por %p637_p11, %p636_p10 }
  0x2b   : > { %p639_p2 = pnand %p638_p1, %p632_p0 }
  0x2d   : > { %642 = shalt.err (!%p639_p2)
}
  0x2e   : > { %519 = dma.hbm_to_vmem [thread:$0]  (!%p811_p9), %s159_s23, 32, %s162_s25, %s148_s26  }
  0x2f   : > { %170 = sbr.rel (%p829_p6) target bundleno = 382 (0x17e), region = 28  ;;  %s172_s22 = sand.u32 (!%p829_p6), 1, %s709_s10  }
  0x30   : > { %s485_s4 = sshll.u32 (!%p829_p6), %s172_s22, 3  ;;  %s173_s5 = scalar_lea.sflag (!%p829_p6), [#allocation4], %s172_s22 }
  0x31   : > { %s176_s6 = scalar_lea.vmem (!%p829_p6), [#allocation3], %s485_s4 }
  0x34   : > { %692 = dma.done.wait (%p793_p7), %s173_s5, 128  }
  0x35   : > { %694 = vsyncadd (%p793_p7), %s173_s5, 4294967168  ;;  %s486_s7 = sshll.u32 %s172_s22, 1  ;;  %s182_s9 = scalar_lea.sflag [#allocation7], %s172_s22 }
  0x36   : > { %s851_s17 = scalar_lea.vmem [#allocation6], %s486_s7 }
  0x37   : > { %696 = dma.done.wait (%p793_p7), %s182_s9, 32  }
  0x38   : > { %698 = vsyncadd (%p793_p7), %s182_s9, 4294967264  ;;  %p208_p9 = scmp.eq.s32.totalorder %s717_s12, 0 }
  0x39   : > { %v214_v0 = vlaneseq (%p208_p9)  ;;  %v729_v1 = vmov (%p208_p9), 0.0  }
  0x3a   : > { %213 = sbr.rel (!%p208_p9) target bundleno = 63 (0x3f), region = 40 }
  0x3b   : > { %vm216_vm0 = vcmp.lt.s32.totalorder (%p208_p9), %v214_v0, 256 }
  0x3c   : > { %218 = vst.msk [vmem:[#allocation2] sm:$0x3] (%p208_p9), %vm216_vm0, %v729_v1 }
  0x3f PF: > { %v219_v2 = vld [vmem:[%s176_s6] sm:$0xff]  ;;  %p345_p12 = scmp.eq.s32.totalorder %s717_s12, 1  ;;  %v730_v20 = vmov 1966171168   ;;  %v253_v22 = vlaneseq  ;;  %v220_v38 = vld [vmem:[%s851_s17] sm:$0x3] }
  0x40   : > { %v488_v3 = vrot.slane %v219_v2, 9  ;;  %v489_v4 = vrot.slane %v219_v2, 10  ;;  %v490_v6 = vrot.slane %v219_v2, 11  ;;  %v251_v21 = vunpack.c.l.s4 %v730_v20 }
  0x41   : > { %v254_v24 = vshrl.u32 %v253_v22, 7  ;;  %vm249_vm1 = vcmp.eq.s32.totalorder %v220_v38, 1  ;;  %v731_v41 = vmov 286326784   ;;  %vm285_vm2 = vcmp.eq.s32.totalorder %v220_v38, 2 }
  0x42   : > { %v225_v5 = vmax.f32 %v219_v2, %v488_v3  ;;  %v252_v23 = vunpack.c.0.s8 %v251_v21  ;;  %v308_v42 = vunpack.c.l.s4 %v731_v41  ;;  %vm299_vm3 = vcmp.eq.s32.totalorder %v220_v38, 3 }
  0x43   : > { %v322_v62 = vld [vmem:[#allocation2] sm:$0x3]  ;;  %vm342_vm4 = vcmp.lt.s32.totalorder %v253_v22, 256  ;;  %v358_v3 = vsub.s32 (%p345_p12), 1, %v254_v24  ;;  %vm362_vm5 = vcmask (%p345_p12), 1040384   ;;  %vm378_vm6 = vcmask (%p345_p12), 0  }
  0x44   : > { %v229_v7 = vmax.f32 %v225_v5, %v489_v4  ;;  %v255_v25 = vsub.s32 %v252_v23, %v254_v24  ;;  %v309_v45 = vunpack.c.0.s8 %v308_v42 }
  0x46   : > { %v233_v8 = vmax.f32 %v229_v7, %v490_v6  ;;  %v256_v31 = vrot.slane %v219_v2, %v255_v25  ;;  %v312_v48 = vsub.s32 %v309_v45, %v254_v24 }
  0x48   : > { %v234_v9 = vsub.f32 %v219_v2, %v233_v8  ;;  %v239_v10 = vrot.slane %v233_v8, 7  ;;  %v275_v11 = vrot.slane %v233_v8, 6  ;;  %v289_v12 = vrot.slane %v233_v8, 5 }
  0x49   : > { %v257_v36 = vcombine.high %v256_v31, %v256_v31  ;;  %v264_v39 = vrot.slane %v256_v31, %v255_v25 }
  0x4a   : > { %v235_v13 = vmul.f32 1.442695, %v234_v9  ;;  %v241_v14 = vsub.f32 %v219_v2, %v239_v10  ;;  %v277_v15 = vsub.f32 %v219_v2, %v275_v11  ;;  %v291_v16 = vsub.f32 %v219_v2, %v289_v12 }
  0x4b   : > { %v271_v40 = vrot.slane %v257_v36, %v255_v25  ;;  %v286_v43 = vcombine.high %v264_v39, %v264_v39  ;;  %v354_v2 = vsub.s32 (%p345_p12), 0, %v254_v24 }
  0x4c   : > { %v242_v17 = vmul.f32 1.442695, %v241_v14  ;;  %v278_v18 = vmul.f32 1.442695, %v277_v15  ;;  %v292_v19 = vmul.f32 1.442695, %v291_v16  ;;  %575 = vpow2.f32 %v235_v13 }
  0x4d   : > { %v274_v44 = vsel %vm249_vm1, %v271_v40, %v264_v39  ;;  %v300_v46 = vcombine.high %v271_v40, %v271_v40 }
  0x4e   : > { %577 = vpow2.f32 %v242_v17  ;;  %v288_v47 = vsel %vm285_vm2, %v286_v43, %v274_v44 }
  0x4f   : > { %579 = vpow2.f32 %v278_v18  ;;  %v302_v49 = vsel %vm299_vm3, %v300_v46, %v288_v47 }
  0x50   : > { %581 = vpow2.f32 %v292_v19  ;;  %v313_v52 = vrot.slane %v302_v49, %v312_v48 }
  0x59   : > { %v576_v26 = vpop.eup %575 }
  0x5b   : > { %v578_v27 = vpop.eup %577 }
  0x5c   : > { %v580_v28 = vpop.eup %579  ;;  %v491_v29 = vrot.slane %v578_v27, 9 }
  0x5d   : > { %v582_v30 = vpop.eup %581  ;;  %v492_v32 = vrot.slane %v580_v28, 10 }
  0x5e   : > { %v248_v33 = vadd.f32 %v576_v26, %v491_v29  ;;  %v493_v34 = vrot.slane %v582_v30, 11 }
  0x60   : > { %v284_v35 = vadd.f32 %v492_v32, %v248_v33 }
  0x62   : > { %v298_v37 = vadd.f32 %v493_v34, %v284_v35 }
  0x64   : > { %583 = vlog2.f32 %v298_v37 }
  0x71   : > { %v584_v50 = vpop.eup %583 }
  0x72   : > { %v304_v51 = vmul.f32 0.6931472, %v584_v50 }
  0x74   : > { %v305_v53 = vadd.f32 %v304_v51, %v233_v8 }
  0x76   : > { %v315_v54 = vsub.f32 %v305_v53, %v313_v52 }
  0x78   : > { %v316_v55 = vsub.f32 0.0, %v315_v54 }
  0x7a   : > { %v317_v56 = vmul.f32 1.442695, %v316_v55 }
  0x7c   : > { %585 = vpow2.f32 %v317_v56 }
  0x89   : > { %v586_v57 = vpop.eup %585 }
  0x8a   : > { %v319_v58 = vsub.f32 1.0, %v586_v57 }
  0x8c   : > { %v320_v59 = vmul.f32 %v319_v58, %v319_v58 }
  0x8e   : > { %v321_v60 = vmul.f32 %v320_v59, %v315_v54 }
  0x90   : > { %v330_v61 = vrot.slane %v321_v60, %v255_v25 }
  0x92   : > { %v337_v63 = vrot.slane %v330_v61, %v255_v25  ;;  %349 = sbr.rel (!%p345_p12) target bundleno = 367 (0x16f), region = 44 }
  0x94   : > { %v339_v0 = vadd.f32 %v337_v63, %v322_v62 }
  0x96   : > { %344 = vst.msk [vmem:[#allocation2] sm:$0x3] %vm342_vm4, %v339_v0 }
  0x9d   : > { %v350_v1 = vld [vmem:[#allocation2] sm:$0x3] }
  0x9e   : > { %v355_v4 = vrot.slane %v350_v1, %v354_v2  ;;  %v359_v5 = vrot.slane %v350_v1, %v358_v3 }
  0xa0   : > { %v363_v6 = vsel %vm362_vm5, %v355_v4, 0.0  ;;  %v364_v7 = vsel %vm362_vm5, %v359_v5, 0.0 }
  0xa1   : > { %v365_v8 = vadd.f32 %v364_v7, %v363_v6 }
  0xa3   : > { %366 = vadd.xlane.f32.xlu0 %v365_v8 }
 0x12c   : > { %v367_v9 = vpop.xlane.xlu0 %366 }
 0x12d   : > { %v368_v10 = vrot.slane %v367_v9, 4 }
 0x12f   : > { %v369_v11 = vadd.f32 %v368_v10, %v367_v9 }
 0x131   : > { %v370_v12 = vrot.slane %v369_v11, 2 }
 0x133   : > { %v371_v13 = vadd.f32 %v370_v12, %v369_v11 }
 0x135   : > { %v372_v14 = vrot.slane %v371_v13, 1 }
 0x137   : > { %v373_v15 = vadd.f32 %v372_v14, %v371_v13 }
 0x139   : > { %503 = vpush %v373_v15 }
 0x16a   : > { %s504_s12 = spop %503 }
 0x16b   : > { %v375_v16 = vstv %s504_s12 }
 0x16c   : > { %v377_v17 = vmul.f32 0.001953125, %v375_v16 }
 0x16e   : > { %379 = vst.msk [vmem:[#allocation8] sm:$0x1] %vm378_vm6, %v377_v17 }
 0x16f PF: > { %p864_p7 = scmp.eq.s32.totalorder %s475_s15, 1  ;;  %s732_s30 = smov [#allocation8]  }
 0x170   : > { %s387_s8 = sshll.u32 %s732_s30, 4  ;;  %s388_s8 = int_to_ptr.vmem [resolvable:$true] %s387_s8 }
 0x171   : > { %s643_s18 = scalar_lea.vmem %s388_s8, 16  ;;  %s649_s19 = scalar_lea.vmem %s388_s8, 32 }
 0x172   : > { %p644_p3 = scmp.ne.s32.totalorder %s388_s8, %s643_s18  ;;  %p650_p6 = scmp.lt.s32.totalorder %s388_s8, %s388_s8 }
 0x173   : > { %p651_p8 = scmp.lt.s32.totalorder %s649_s19, %s643_s18 }
 0x174   : > { %p645_p4 = pnand %p644_p3, %p864_p7 }
 0x175   : > { %p652_p13 = por %p651_p8, %p650_p6 }
 0x176   : > { %p646_p5 = pneg %p645_p4 }
 0x178   : > { %p653_p0 = pnand %p652_p13, %p646_p5 }
 0x17a   : > { %656 = shalt.err (!%p653_p0)
}
 0x17b   : > { %510 = dma.vmem_to_hbm [thread:$0]  (%p864_p7), %s388_s8, 16, %s899_s2, [#allocation5]  }
 0x17c   : > { %700 = dma.done.wait (%p864_p7), [#allocation5], 16  }
 0x17d   : > { %702 = vsyncadd (%p864_p7), [#allocation5], 4294967280 }
 0x17e PF: > { %s19_s14 = sadd.s32 1, %s725_s14   ;;  %s905_s9 = smov %s709_s10 }
 0x17f   : > { %p16_p10 = scmp.ge.s32.totalorder %s19_s14, 4   ;;  %s906_s10 = smov %s713_s11 }
 0x180   : > { %s907_s11 = smov %s799_s21  ;;  %s908_s12 = smov %s721_s13 }
 0x181   : > { %s909_s13 = smov %s911_s16  ;;  %18 = sbr.rel (!%p16_p10) target bundleno = 7 (0x7), region = 86 }
 0x186   :  { %400 = vsyncpa [#allocation4], 1 }
 0x187   :  { %402 = vsyncpa [#allocation4 + $0x1], 1 }
 0x188   :  { %403 = vsyncpa [#allocation7], 1 }
 0x189   :  { %405 = vsyncpa [#allocation7 + $0x1], 1 }
 0x18a   :  { %406 = vsyncpa [#allocation5], 1 }
 0x18b   :  { %408 = vsyncpa [#allocation5 + $0x1], 1 }

</bundles_post_ra>
